<compile_context>
chip_gen: v7x
topology: tpu7x:2x2x1
jax: 0.10.0
libtpu: 0.0.40
codegen_flags: <defaults>
</compile_context>

<pallas_src>
import jax
import jax.numpy as jnp
from jax.experimental import pallas as pl
from jax.experimental.pallas import tpu as pltpu


def _coattn_kernel(ns_ref, nv_ref, s_ref, v_ref,
                   w1_ref, w2s_ref, w2v_ref, w3s_ref, w3v_ref,
                   out_s_ref, out_v_ref):
    tb, n_s, d = s_ref.shape
    _, n_v, _ = v_ref.shape
    h = w2s_ref.shape[1]

    s = s_ref[...]                         # (TB, Ns, D)  f32
    v = v_ref[...]                         # (TB, Nv, D)  f32
    num_s = ns_ref[0, 0]
    num_v = nv_ref[0, 0]

    # Shared-weight projections with large M: flatten the (TB, N) axes so the
    # MXU sees (TB*N, D) @ (D, *) instead of TB tiny (N, D) matmuls.
    # (Ns, Nv are multiples of 8 so these reshapes are layout no-ops.)
    s2 = s.reshape(tb * n_s, d)
    v2 = v.reshape(tb * n_v, d)
    s1 = jnp.dot(s2, w1_ref[...],
                 preferred_element_type=jnp.float32).reshape(tb, n_s, d)
    s_t = jnp.dot(s2, w2s_ref[...],
                  preferred_element_type=jnp.float32).reshape(tb, n_s, h)
    v_t = jnp.dot(v2, w2v_ref[...],
                  preferred_element_type=jnp.float32).reshape(tb, n_v, h)

    # correlation_matrix = tanh(line1(s) @ v^T): contract the feature dim
    # directly (batched dot_general, no explicit transpose).
    corr = jnp.tanh(jnp.einsum('bsd,bvd->bsv', s1, v,
                               preferred_element_type=jnp.float32))   # (TB,Ns,Nv)

    # Cross-attention features; att_v contracts corr's Ns axis directly
    # instead of materializing corr.T.
    att_s = jnp.tanh(s_t + jnp.einsum('bsv,bvh->bsh', corr, v_t,
                                      preferred_element_type=jnp.float32))
    att_v = jnp.tanh(v_t + jnp.einsum('bsv,bsh->bvh', corr, s_t,
                                      preferred_element_type=jnp.float32))

    # line3 (H -> 1) as VPU broadcast-multiply + lane reduction; avoids a
    # degenerate N=1 MXU matmul.  w3*_ref are (1, H) rows.
    logit_s = jnp.sum(att_s * w3s_ref[...], axis=-1, keepdims=True)   # (TB,Ns,1)
    logit_v = jnp.sum(att_v * w3v_ref[...], axis=-1, keepdims=True)   # (TB,Nv,1)

    # softmax over the token axis (dim=-2 in torch), per slab.
    def _softmax_tokens(x):
        m = jnp.max(x, axis=1, keepdims=True)
        e = jnp.exp(x - m)
        return e / jnp.sum(e, axis=1, keepdims=True)

    a_s = _softmax_tokens(logit_s)
    a_v = _softmax_tokens(logit_v)

    out_s_ref[...] = (a_s * s * num_s).astype(out_s_ref.dtype)
    out_v_ref[...] = (a_v * v * num_v).astype(out_v_ref.dtype)


def _pick_tb(bg, n_s, n_v, d, h, vmem_budget_bytes=24 * 1024 * 1024):
    """Largest divisor of BG whose per-step VMEM footprint fits the budget
    (conservative vs. the 32 MiB default scoped VMEM on v7x)."""
    per_slab_bytes = 4 * (
        4 * (n_s + n_v) * d                                   # dbl-buffered in+out
        + n_s * d + n_s * n_v + 2 * (n_s + n_v) * h + n_s + n_v  # f32 intermediates
    )
    tb = max(1, min(bg, vmem_budget_bytes // max(per_slab_bytes, 1)))
    while bg % tb:
        tb -= 1
    return tb


def co_attention_pallas(modality_s, modality_v, num_s, num_v, params):
    B, G, Ns, D = modality_s.shape
    _, _, Nv, _ = modality_v.shape
    H = params["w2s"].shape[0]          # nn.Linear weight is (out, in)
    BG = B * G
    TB = _pick_tb(BG, Ns, Nv, D, H)

    s_flat = modality_s.reshape(BG, Ns, D)
    v_flat = modality_v.reshape(BG, Nv, D)

    # Pre-transpose weights to (in, out) so the kernel does x @ W; line3
    # weights are passed as (1, H) rows for the VPU reduction.
    w1t = params["w1"].T                # (D, D)
    w2st = params["w2s"].T              # (D, H)
    w2vt = params["w2v"].T              # (D, H)
    w3s_row = params["w3s"]             # (1, H)
    w3v_row = params["w3v"]             # (1, H)

    ns_arr = jnp.asarray(num_s, jnp.float32).reshape(1, 1)
    nv_arr = jnp.asarray(num_v, jnp.float32).reshape(1, 1)

    flops_per_slab = 2 * (Ns * D * D + Ns * D * H + Nv * D * H
                          + Ns * Nv * D + 2 * Ns * Nv * H)
    transc_per_slab = Ns * Nv + Ns * H + Nv * H + Ns + Nv
    bytes_accessed = 2 * BG * (Ns + Nv) * D * 4 + (D * D + 2 * D * H + 2 * H) * 4
    cost = pl.CostEstimate(flops=BG * flops_per_slab,
                           transcendentals=BG * transc_per_slab,
                           bytes_accessed=bytes_accessed)

    out_s, out_v = pl.pallas_call(
        _coattn_kernel,
        grid=(BG // TB,),
        in_specs=[
            pl.BlockSpec(memory_space=pltpu.MemorySpace.SMEM),   # num_s scalar
            pl.BlockSpec(memory_space=pltpu.MemorySpace.SMEM),   # num_v scalar
            pl.BlockSpec((TB, Ns, D), lambda i: (i, 0, 0)),      # modality_s slabs
            pl.BlockSpec((TB, Nv, D), lambda i: (i, 0, 0)),      # modality_v slabs
            pl.BlockSpec((D, D), lambda i: (0, 0)),              # line1
            pl.BlockSpec((D, H), lambda i: (0, 0)),              # line2_s
            pl.BlockSpec((D, H), lambda i: (0, 0)),              # line2_v
            pl.BlockSpec((1, H), lambda i: (0, 0)),              # line3_s (row)
            pl.BlockSpec((1, H), lambda i: (0, 0)),              # line3_v (row)
        ],
        out_specs=[
            pl.BlockSpec((TB, Ns, D), lambda i: (i, 0, 0)),
            pl.BlockSpec((TB, Nv, D), lambda i: (i, 0, 0)),
        ],
        out_shape=[
            jax.ShapeDtypeStruct((BG, Ns, D), modality_s.dtype),
            jax.ShapeDtypeStruct((BG, Nv, D), modality_v.dtype),
        ],
        compiler_params=pltpu.CompilerParams(dimension_semantics=("parallel",)),
        cost_estimate=cost,
    )(ns_arr, nv_arr, s_flat, v_flat, w1t, w2st, w2vt, w3s_row, w3v_row)

    return out_s.reshape(B, G, Ns, D), out_v.reshape(B, G, Nv, D)


def co_attention_reference(modality_s, modality_v, num_s, num_v, params):
    """Pure-JAX reference matching the PyTorch forward exactly."""
    s1 = modality_s @ params["w1"].T
    corr = jnp.tanh(jnp.einsum("bgsd,bgvd->bgsv", s1, modality_v))
    s_t = modality_s @ params["w2s"].T
    v_t = modality_v @ params["w2v"].T
    att_s = jnp.tanh(s_t + jnp.einsum("bgsv,bgvh->bgsh", corr, v_t))
    att_v = jnp.tanh(v_t + jnp.einsum("bgsv,bgsh->bgvh", corr, s_t))
    a_s = jax.nn.softmax(att_s @ params["w3s"].T, axis=-2)
    a_v = jax.nn.softmax(att_v @ params["w3v"].T, axis=-2)
    return a_s * modality_s * num_s, a_v * modality_v * num_v


def init_params(key, input_feature_size, hidden_dim):
    ks = jax.random.split(key, 5)
    scale_d = 1.0 / jnp.sqrt(input_feature_size)
    scale_h = 1.0 / jnp.sqrt(hidden_dim)
    return {
        # nn.Linear weight shape is (out_features, in_features)
        "w1": jax.random.uniform(ks[0], (input_feature_size, input_feature_size),
                                 jnp.float32, -scale_d, scale_d),
        "w2s": jax.random.uniform(ks[1], (hidden_dim, input_feature_size),
                                  jnp.float32, -scale_d, scale_d),
        "w2v": jax.random.uniform(ks[2], (hidden_dim, input_feature_size),
                                  jnp.float32, -scale_d, scale_d),
        "w3s": jax.random.uniform(ks[3], (1, hidden_dim),
                                  jnp.float32, -scale_h, scale_h),
        "w3v": jax.random.uniform(ks[4], (1, hidden_dim),
                                  jnp.float32, -scale_h, scale_h),
    }


if __name__ == "__main__":
    B, G = 2, 2            # batch, groups (the two leading dims of the 4-D inputs)
    Ns, Nv = 8, 16         # sequence lengths of modality_s / modality_v
    D, H = 32, 16          # input_feature_size, hidden_dim

    key = jax.random.PRNGKey(0)
    k_s, k_v, k_p = jax.random.split(key, 3)

    modality_s = jax.random.normal(k_s, (B, G, Ns, D), jnp.float32)
    modality_v = jax.random.normal(k_v, (B, G, Nv, D), jnp.float32)
    num_s = 3.0
    num_v = 5.0

    params = init_params(k_p, D, H)

    out_s, out_v = co_attention_pallas(modality_s, modality_v, num_s, num_v, params)
    out_s = jax.block_until_ready(out_s)
    out_v = jax.block_until_ready(out_v)

    ref_s, ref_v = co_attention_reference(modality_s, modality_v, num_s, num_v, params)

    assert jnp.allclose(out_s, ref_s, atol=1e-5, rtol=1e-5), "modality_s mismatch"
    assert jnp.allclose(out_v, ref_v, atol=1e-5, rtol=1e-5), "modality_v mismatch"

    print("KERNEL_OK")
</pallas_src>

<mosaic_0001>
module attributes {stable_mosaic.version = 11 : i64} {
  func.func @_coattn_kernel(%arg0: i32, %arg1: memref<1x1xf32, #tpu.memory_space<smem>>, %arg2: memref<1x1xf32, #tpu.memory_space<smem>>, %arg3: memref<4x8x32xf32, #tpu.memory_space<vmem>>, %arg4: memref<4x16x32xf32, #tpu.memory_space<vmem>>, %arg5: memref<32x32xf32, #tpu.memory_space<vmem>>, %arg6: memref<32x16xf32, #tpu.memory_space<vmem>>, %arg7: memref<32x16xf32, #tpu.memory_space<vmem>>, %arg8: memref<1x16xf32, #tpu.memory_space<vmem>>, %arg9: memref<1x16xf32, #tpu.memory_space<vmem>>, %arg10: memref<4x8x32xf32, #tpu.memory_space<vmem>>, %arg11: memref<4x16x32xf32, #tpu.memory_space<vmem>>) attributes {dimension_semantics = [#tpu.dimension_semantics<parallel>], iteration_bounds = array<i64: 1>, scalar_prefetch = 0 : i64, scratch_operands = 0 : i64, tpu.core_type = #tpu.core_type<tc>, window_params = [{transform_indices = @transform_0, window_bounds = array<i64: 1, 1>}, {transform_indices = @transform_1, window_bounds = array<i64: 1, 1>}, {transform_indices = @transform_2, window_bounds = array<i64: 4, 8, 32>}, {transform_indices = @transform_3, window_bounds = array<i64: 4, 16, 32>}, {pipeline_mode = #tpu.pipeline_mode<synchronous>, transform_indices = @transform_4, window_bounds = array<i64: 32, 32>}, {pipeline_mode = #tpu.pipeline_mode<synchronous>, transform_indices = @transform_5, window_bounds = array<i64: 32, 16>}, {pipeline_mode = #tpu.pipeline_mode<synchronous>, transform_indices = @transform_6, window_bounds = array<i64: 32, 16>}, {pipeline_mode = #tpu.pipeline_mode<synchronous>, transform_indices = @transform_7, window_bounds = array<i64: 1, 16>}, {pipeline_mode = #tpu.pipeline_mode<synchronous>, transform_indices = @transform_8, window_bounds = array<i64: 1, 16>}, {transform_indices = @transform_9, window_bounds = array<i64: 4, 8, 32>}, {transform_indices = @transform_10, window_bounds = array<i64: 4, 16, 32>}]} {
    %c0 = arith.constant 0 : index
    %c0_0 = arith.constant 0 : index
    %c0_1 = arith.constant 0 : index
    %0 = vector.load %arg3[%c0, %c0_0, %c0_1] : memref<4x8x32xf32, #tpu.memory_space<vmem>>, vector<4x8x32xf32>
    %c0_2 = arith.constant 0 : index
    %c0_3 = arith.constant 0 : index
    %c0_4 = arith.constant 0 : index
    %1 = vector.load %arg4[%c0_2, %c0_3, %c0_4] : memref<4x16x32xf32, #tpu.memory_space<vmem>>, vector<4x16x32xf32>
    %c0_5 = arith.constant 0 : index
    %c0_6 = arith.constant 0 : index
    %2 = memref.load %arg1[%c0_5, %c0_6] : memref<1x1xf32, #tpu.memory_space<smem>>
    %c0_7 = arith.constant 0 : index
    %c0_8 = arith.constant 0 : index
    %3 = memref.load %arg2[%c0_7, %c0_8] : memref<1x1xf32, #tpu.memory_space<smem>>
    %4 = vector.shape_cast %0 : vector<4x8x32xf32> to vector<32x32xf32>
    %5 = vector.shape_cast %1 : vector<4x16x32xf32> to vector<64x32xf32>
    %c0_9 = arith.constant 0 : index
    %c0_10 = arith.constant 0 : index
    %6 = vector.load %arg5[%c0_9, %c0_10] : memref<32x32xf32, #tpu.memory_space<vmem>>, vector<32x32xf32>
    %cst = arith.constant dense<0.000000e+00> : vector<32x32xf32>
    %7 = tpu.matmul %4, %6, %cst {dimension_numbers = #tpu.dot_dimension_numbers<[1], [0], [0], [1], [0, 0, 1, 1], [], []>} : vector<32x32xf32>, vector<32x32xf32>, vector<32x32xf32> -> vector<32x32xf32>
    %8 = vector.shape_cast %7 : vector<32x32xf32> to vector<4x8x32xf32>
    %c0_11 = arith.constant 0 : index
    %c0_12 = arith.constant 0 : index
    %9 = vector.load %arg6[%c0_11, %c0_12] : memref<32x16xf32, #tpu.memory_space<vmem>>, vector<32x16xf32>
    %cst_13 = arith.constant dense<0.000000e+00> : vector<32x16xf32>
    %10 = tpu.matmul %4, %9, %cst_13 {dimension_numbers = #tpu.dot_dimension_numbers<[1], [0], [0], [1], [0, 0, 1, 1], [], []>} : vector<32x32xf32>, vector<32x16xf32>, vector<32x16xf32> -> vector<32x16xf32>
    %11 = vector.shape_cast %10 : vector<32x16xf32> to vector<4x8x16xf32>
    %c0_14 = arith.constant 0 : index
    %c0_15 = arith.constant 0 : index
    %12 = vector.load %arg7[%c0_14, %c0_15] : memref<32x16xf32, #tpu.memory_space<vmem>>, vector<32x16xf32>
    %cst_16 = arith.constant dense<0.000000e+00> : vector<64x16xf32>
    %13 = tpu.matmul %5, %12, %cst_16 {dimension_numbers = #tpu.dot_dimension_numbers<[1], [0], [0], [1], [0, 0, 1, 1], [], []>} : vector<64x32xf32>, vector<32x16xf32>, vector<64x16xf32> -> vector<64x16xf32>
    %14 = vector.shape_cast %13 : vector<64x16xf32> to vector<4x16x16xf32>
    "tpu.trace_start"() <{level = 10 : i32, message = "bsd,bvd->bsv"}> : () -> ()
    %cst_17 = arith.constant dense<0.000000e+00> : vector<4x8x16xf32>
    %15 = tpu.matmul %8, %1, %cst_17 {dimension_numbers = #tpu.dot_dimension_numbers<[2], [2], [1], [1], [0, 0, 0, 1, 1, 1], [0], [0]>} : vector<4x8x32xf32>, vector<4x16x32xf32>, vector<4x8x16xf32> -> vector<4x8x16xf32>
    "tpu.trace_stop"() : () -> ()
    %16 = math.tanh %15 : vector<4x8x16xf32>
    "tpu.trace_start"() <{level = 10 : i32, message = "bsv,bvh->bsh"}> : () -> ()
    %cst_18 = arith.constant dense<0.000000e+00> : vector<4x8x16xf32>
    %17 = tpu.matmul %16, %14, %cst_18 {dimension_numbers = #tpu.dot_dimension_numbers<[2], [1], [1], [2], [0, 0, 0, 1, 1, 2], [0], [0]>} : vector<4x8x16xf32>, vector<4x16x16xf32>, vector<4x8x16xf32> -> vector<4x8x16xf32>
    "tpu.trace_stop"() : () -> ()
    %18 = arith.addf %11, %17 : vector<4x8x16xf32>
    %19 = math.tanh %18 : vector<4x8x16xf32>
    "tpu.trace_start"() <{level = 10 : i32, message = "bsv,bsh->bvh"}> : () -> ()
    %cst_19 = arith.constant dense<0.000000e+00> : vector<4x16x16xf32>
    %20 = tpu.matmul %16, %11, %cst_19 {dimension_numbers = #tpu.dot_dimension_numbers<[1], [1], [2], [2], [0, 0, 0, 2, 1, 2], [0], [0]>} : vector<4x8x16xf32>, vector<4x8x16xf32>, vector<4x16x16xf32> -> vector<4x16x16xf32>
    "tpu.trace_stop"() : () -> ()
    %21 = arith.addf %14, %20 : vector<4x16x16xf32>
    %22 = math.tanh %21 : vector<4x16x16xf32>
    %c0_20 = arith.constant 0 : index
    %c0_21 = arith.constant 0 : index
    %23 = vector.load %arg8[%c0_20, %c0_21] : memref<1x16xf32, #tpu.memory_space<vmem>>, vector<1x16xf32>
    %24 = vector.shape_cast %23 : vector<1x16xf32> to vector<1x1x16xf32>
    %25 = vector.broadcast %24 : vector<1x1x16xf32> to vector<4x8x16xf32>
    %26 = arith.mulf %19, %25 : vector<4x8x16xf32>
    %cst_22 = arith.constant dense<0.000000e+00> : vector<4x8xf32>
    %27 = vector.multi_reduction <add>, %26, %cst_22 [2] : vector<4x8x16xf32> to vector<4x8xf32>
    %28 = vector.shape_cast %27 : vector<4x8xf32> to vector<4x8x1xf32>
    %c0_23 = arith.constant 0 : index
    %c0_24 = arith.constant 0 : index
    %29 = vector.load %arg9[%c0_23, %c0_24] : memref<1x16xf32, #tpu.memory_space<vmem>>, vector<1x16xf32>
    %30 = vector.shape_cast %29 : vector<1x16xf32> to vector<1x1x16xf32>
    %31 = vector.broadcast %30 : vector<1x1x16xf32> to vector<4x16x16xf32>
    %32 = arith.mulf %22, %31 : vector<4x16x16xf32>
    %cst_25 = arith.constant dense<0.000000e+00> : vector<4x16xf32>
    %33 = vector.multi_reduction <add>, %32, %cst_25 [2] : vector<4x16x16xf32> to vector<4x16xf32>
    %34 = vector.shape_cast %33 : vector<4x16xf32> to vector<4x16x1xf32>
    %cst_26 = arith.constant dense<0xFF800000> : vector<4x1xf32>
    %35 = vector.multi_reduction <maximumf>, %28, %cst_26 [1] : vector<4x8x1xf32> to vector<4x1xf32>
    %36 = vector.shape_cast %35 : vector<4x1xf32> to vector<4x1x1xf32>
    %37 = vector.broadcast %36 : vector<4x1x1xf32> to vector<4x8x1xf32>
    %38 = arith.subf %28, %37 : vector<4x8x1xf32>
    %39 = math.exp %38 : vector<4x8x1xf32>
    %cst_27 = arith.constant dense<0.000000e+00> : vector<4x1xf32>
    %40 = vector.multi_reduction <add>, %39, %cst_27 [1] : vector<4x8x1xf32> to vector<4x1xf32>
    %41 = vector.shape_cast %40 : vector<4x1xf32> to vector<4x1x1xf32>
    %42 = vector.broadcast %41 : vector<4x1x1xf32> to vector<4x8x1xf32>
    %43 = arith.divf %39, %42 : vector<4x8x1xf32>
    %cst_28 = arith.constant dense<0xFF800000> : vector<4x1xf32>
    %44 = vector.multi_reduction <maximumf>, %34, %cst_28 [1] : vector<4x16x1xf32> to vector<4x1xf32>
    %45 = vector.shape_cast %44 : vector<4x1xf32> to vector<4x1x1xf32>
    %46 = vector.broadcast %45 : vector<4x1x1xf32> to vector<4x16x1xf32>
    %47 = arith.subf %34, %46 : vector<4x16x1xf32>
    %48 = math.exp %47 : vector<4x16x1xf32>
    %cst_29 = arith.constant dense<0.000000e+00> : vector<4x1xf32>
    %49 = vector.multi_reduction <add>, %48, %cst_29 [1] : vector<4x16x1xf32> to vector<4x1xf32>
    %50 = vector.shape_cast %49 : vector<4x1xf32> to vector<4x1x1xf32>
    %51 = vector.broadcast %50 : vector<4x1x1xf32> to vector<4x16x1xf32>
    %52 = arith.divf %48, %51 : vector<4x16x1xf32>
    %53 = vector.broadcast %43 : vector<4x8x1xf32> to vector<4x8x32xf32>
    %54 = arith.mulf %53, %0 : vector<4x8x32xf32>
    %55 = vector.broadcast %2 : f32 to vector<4x8x32xf32>
    %56 = arith.mulf %54, %55 : vector<4x8x32xf32>
    %c0_30 = arith.constant 0 : index
    %c0_31 = arith.constant 0 : index
    %c0_32 = arith.constant 0 : index
    %57 = vector.load %arg10[%c0_30, %c0_31, %c0_32] : memref<4x8x32xf32, #tpu.memory_space<vmem>>, vector<4x8x32xf32>
    tpu.vector_store %arg10[%c0_30, %c0_31, %c0_32], %56 {strides = array<i32>} : memref<4x8x32xf32, #tpu.memory_space<vmem>>, vector<4x8x32xf32>,
    %58 = vector.broadcast %52 : vector<4x16x1xf32> to vector<4x16x32xf32>
    %59 = arith.mulf %58, %1 : vector<4x16x32xf32>
    %60 = vector.broadcast %3 : f32 to vector<4x16x32xf32>
    %61 = arith.mulf %59, %60 : vector<4x16x32xf32>
    %c0_33 = arith.constant 0 : index
    %c0_34 = arith.constant 0 : index
    %c0_35 = arith.constant 0 : index
    %62 = vector.load %arg11[%c0_33, %c0_34, %c0_35] : memref<4x16x32xf32, #tpu.memory_space<vmem>>, vector<4x16x32xf32>
    tpu.vector_store %arg11[%c0_33, %c0_34, %c0_35], %61 {strides = array<i32>} : memref<4x16x32xf32, #tpu.memory_space<vmem>>, vector<4x16x32xf32>,
    return
  }
  func.func @transform_0(%arg0: i32) -> (i32, i32) {
    %c0_i32 = arith.constant 0 : i32
    %c0_i32_0 = arith.constant 0 : i32
    %c0_i32_1 = arith.constant 0 : i32
    return %c0_i32, %c0_i32_0 : i32, i32
  }
  func.func @transform_1(%arg0: i32) -> (i32, i32) {
    %c0_i32 = arith.constant 0 : i32
    %c0_i32_0 = arith.constant 0 : i32
    %c0_i32_1 = arith.constant 0 : i32
    return %c0_i32, %c0_i32_0 : i32, i32
  }
  func.func @transform_2(%arg0: i32) -> (i32, i32, i32) {
    %c0_i32 = arith.constant 0 : i32
    %c0_i32_0 = arith.constant 0 : i32
    %c0_i32_1 = arith.constant 0 : i32
    return %arg0, %c0_i32, %c0_i32_0 : i32, i32, i32
  }
  func.func @transform_3(%arg0: i32) -> (i32, i32, i32) {
    %c0_i32 = arith.constant 0 : i32
    %c0_i32_0 = arith.constant 0 : i32
    %c0_i32_1 = arith.constant 0 : i32
    return %arg0, %c0_i32, %c0_i32_0 : i32, i32, i32
  }
  func.func @transform_4(%arg0: i32) -> (i32, i32) {
    %c0_i32 = arith.constant 0 : i32
    %c0_i32_0 = arith.constant 0 : i32
    %c0_i32_1 = arith.constant 0 : i32
    return %c0_i32, %c0_i32_0 : i32, i32
  }
  func.func @transform_5(%arg0: i32) -> (i32, i32) {
    %c0_i32 = arith.constant 0 : i32
    %c0_i32_0 = arith.constant 0 : i32
    %c0_i32_1 = arith.constant 0 : i32
    return %c0_i32, %c0_i32_0 : i32, i32
  }
  func.func @transform_6(%arg0: i32) -> (i32, i32) {
    %c0_i32 = arith.constant 0 : i32
    %c0_i32_0 = arith.constant 0 : i32
    %c0_i32_1 = arith.constant 0 : i32
    return %c0_i32, %c0_i32_0 : i32, i32
  }
  func.func @transform_7(%arg0: i32) -> (i32, i32) {
    %c0_i32 = arith.constant 0 : i32
    %c0_i32_0 = arith.constant 0 : i32
    %c0_i32_1 = arith.constant 0 : i32
    return %c0_i32, %c0_i32_0 : i32, i32
  }
  func.func @transform_8(%arg0: i32) -> (i32, i32) {
    %c0_i32 = arith.constant 0 : i32
    %c0_i32_0 = arith.constant 0 : i32
    %c0_i32_1 = arith.constant 0 : i32
    return %c0_i32, %c0_i32_0 : i32, i32
  }
  func.func @transform_9(%arg0: i32) -> (i32, i32, i32) {
    %c0_i32 = arith.constant 0 : i32
    %c0_i32_0 = arith.constant 0 : i32
    %c0_i32_1 = arith.constant 0 : i32
    return %arg0, %c0_i32, %c0_i32_0 : i32, i32, i32
  }
  func.func @transform_10(%arg0: i32) -> (i32, i32, i32) {
    %c0_i32 = arith.constant 0 : i32
    %c0_i32_0 = arith.constant 0 : i32
    %c0_i32_1 = arith.constant 0 : i32
    return %arg0, %c0_i32, %c0_i32_0 : i32, i32, i32
  }
}

</mosaic_0001>

<bundles_post_ra>
// kernel: tpu_custom_call.1
= control target key start
LH: loop header
LB: loop body
LE: loop exit
PB: predicated region body
PF: predicated region fallthrough
CT: control target
= control target key end

     0   :  { %18 = vsyncpa [#allocation5], 0  ;;  %s2621_s0 = inlined_call_operand.<no memory space> [shape: f32[1,1], index: 0, kind: input, shape index: {}]   ;;  %s2622_s1 = inlined_call_operand.<no memory space> [shape: f32[1,1], index: 1, kind: input, shape index: {}]   ;;  %s2623_s2 = inlined_call_operand.vmem [shape: f32[4,8,32], index: 2, kind: input, shape index: {}]   ;;  %s2624_s3 = inlined_call_operand.vmem [shape: f32[4,16,32], index: 3, kind: input, shape index: {}]   ;;  %s2625_s4 = inlined_call_operand.hbm [shape: f32[32,32], index: 4, kind: input, shape index: {}]   ;;  %s2626_s5 = inlined_call_operand.vmem [shape: f32[32,16], index: 5, kind: input, shape index: {}]   ;;  %s2627_s6 = inlined_call_operand.vmem [shape: f32[32,16], index: 6, kind: input, shape index: {}]   ;;  %s2628_s7 = inlined_call_operand.vmem [shape: f32[1,16], index: 7, kind: input, shape index: {}]   ;;  %s2629_s8 = inlined_call_operand.vmem [shape: f32[1,16], index: 8, kind: input, shape index: {}]   ;;  %s2630_s9 = inlined_call_operand.hbm [shape: f32[4,8,32], index: 9, kind: output, shape index: {0}]   ;;  %s2631_s10 = inlined_call_operand.hbm [shape: f32[4,16,32], index: 10, kind: output, shape index: {1}]  }
   0x1   :  { %19 = vsyncpa [#allocation6], 0 }
   0x2   :  { %20 = vsyncpa [#allocation9], 0  ;;  %s2183_s13 = smov [#allocation4]   ;;  %s2111_s17 = scalar_lea.hbm %s2625_s4, 512 }
   0x3   :  { %s34_s14 = sshll.u32 %s2183_s13, 4  ;;  %p2112_p0 = scmp.ne.s32.totalorder %s2625_s4, %s2111_s17  ;;  %s35_s14 = int_to_ptr.vmem [resolvable:$true] %s34_s14 }
   0x4   :  { %p2115_p1 = scmp.lt.u32.totalorder %s2111_s17, %s2625_s4 }
   0x6   :  { %p2117_p2 = pnand %p2115_p1, %p2112_p0 }
   0x8   :  { %2120 = shalt.err (!%p2117_p2)
}
   0x9   :  { %s2121_s22 = scalar_lea.vmem %s35_s14, 512  ;;  %p2126_p4 = scmp.lt.s32.totalorder %s35_s14, %s35_s14 }
   0xa   :  { %p2122_p3 = scmp.ne.s32.totalorder %s35_s14, %s2121_s22  ;;  %p2127_p5 = scmp.lt.s32.totalorder %s2121_s22, %s2121_s22 }
   0xc   :  { %p2128_p6 = por %p2127_p5, %p2126_p4 }
   0xe   :  { %p2129_p7 = pnand %p2128_p6, %p2122_p3 }
  0x10   :  { %2132 = shalt.err (!%p2129_p7)
}
  0x11   :  { %s2184_s23 = smov 128   ;;  %s2185_s24 = smov 8  }
  0x12   :  { %40 = dma.hbm_to_vmem [thread:$0]  %s2625_s4, 512, %s35_s14, [#allocation5], %s2184_s23, %s2184_s23, %s2185_s24  }
  0x13   :  { %2177 = dma.done.wait [#allocation5], 512  }
  0x14   :  { %2178 = vsyncadd [#allocation5], 4294966784  ;;  %vm70_vm0 = vcmask 261120   ;;  %v66_v0 = vld [vmem:[#allocation4] sm:$0xff]  ;;  %v67_v1 = vld [vmem:[#allocation4 + $0x8] sm:$0xff]  ;;  %v2186_v23 = vmov 0.0|0.0  }
  0x15   :  { %v68_v2 = vld [vmem:[#allocation4 + $0x10] sm:$0xff]  ;;  %v1979_v3 = vpack.c.bf16 %v67_v1, %v66_v0  ;;  %v69_v4 = vld [vmem:[#allocation4 + $0x18] sm:$0xff]  ;;  %v2264_v5 = vld [vmem:[%s2623_s2] sm:$0xff]  ;;  %vm2187_vm2 = vmmov 0   ;;  %v2188_v34 = vmov 0.0   ;;  %vm686_vm3 = vcmask 130048  }
  0x16   :  { %v1983_v6 = vpack.c.bf16 %v69_v4, %v68_v2  ;;  %1863 = vmatprep.mubr.msk.f32.mxu0 %vm70_vm0, %v2264_v5  ;;  %v257_v7 = vld [vmem:[%s2627_s6] sm:$0xff]  ;;  %1877 = vmatprep.mubr.msk.f32.mxu1 %vm70_vm0, %v2264_v5  ;;  %v258_v8 = vld [vmem:[%s2627_s6 + $0x8] sm:$0xff]  ;;  %v170_v12 = vld [vmem:[%s2626_s5 + $0x10] sm:$0xff]  ;;  %vm1019_vm4 = vcmask 64512   ;;  %s2190_s29 = smov [#allocation7]  }
  0x17   :  { %1980 = vmatprep.subr.bf16.mxu0 %v1979_v3  ;;  %v168_v9 = vld [vmem:[%s2626_s5] sm:$0xff]  ;;  %v169_v10 = vld [vmem:[%s2626_s5 + $0x8] sm:$0xff]  ;;  %v1995_v13 = vpack.c.bf16 %v258_v8, %v257_v7  ;;  %v171_v14 = vld [vmem:[%s2626_s5 + $0x18] sm:$0xff]  ;;  %s1721_s30 = sshll.u32 %s2190_s29, 4  ;;  %s2582_s30 = int_to_ptr.vmem [resolvable:$true] %s1721_s30 }
  0x18   :  { %1982 = vmatpush3.bf16.msra.mxu0 %v1979_v3  ;;  %v1987_v11 = vpack.c.bf16 %v169_v10, %v168_v9  ;;  %v259_v15 = vld [vmem:[%s2627_s6 + $0x10] sm:$0xff]  ;;  %v260_v16 = vld [vmem:[%s2627_s6 + $0x18] sm:$0xff]  ;;  %v1991_v17 = vpack.c.bf16 %v171_v14, %v170_v12  ;;  %v2297_v18 = vld [vmem:[%s2623_s2 + $0x8] sm:$0xff] }
  0x19   :  { %1984 = vmatprep.subr.bf16.mxu0 %v1983_v6  ;;  %v2302_v19 = vld [vmem:[%s2623_s2 + $0x10] sm:$0xff]  ;;  %v1999_v20 = vpack.c.bf16 %v260_v16, %v259_v15  ;;  %v2311_v21 = vld [vmem:[%s2623_s2 + $0x18] sm:$0xff]  ;;  %v2316_v22 = vld [vmem:[%s2624_s3] sm:$0xff] }
  0x1a   :  { %1988 = vmatprep.subr.bf16.mxu1 %v1987_v11  ;;  %v2326_v24 = vld [vmem:[%s2624_s3 + $0x8] sm:$0xff]  ;;  %vm2337_vm1 = vmpackc.low %vm70_vm0, %vm70_vm0  ;;  %v2344_v27 = vld [vmem:[%s2624_s3 + $0x10] sm:$0xff] }
  0x1b   :  { %1990 = vmatpush3.bf16.msra.mxu1 %v1987_v11  ;;  %v2004_v25 = vpack.c.bf16 %v2326_v24, %v2316_v22  ;;  %v2349_v28 = vld [vmem:[%s2624_s3 + $0x20] sm:$0xff]  ;;  %v2354_v29 = vld [vmem:[%s2624_s3 + $0x28] sm:$0xff]  ;;  %v2365_v30 = vld [vmem:[%s2624_s3 + $0x18] sm:$0xff] }
  0x1c   :  { %1986 = vmatpush3.bf16.msra.mxu0 %v1983_v6  ;;  %1992 = vmatprep.subr.bf16.mxu1 %v1991_v17  ;;  %v2012_v31 = vpack.c.bf16 %v2354_v29, %v2349_v28  ;;  %v2384_v32 = vld [vmem:[%s2624_s3 + $0x30] sm:$0xff]  ;;  %v2391_v33 = vld [vmem:[%s2624_s3 + $0x38] sm:$0xff]  ;;  %v2008_v35 = vpack.c.bf16 %v2365_v30, %v2344_v27 }
  0x1d   :  { %1996 = vmatprep.subr.bf16.mxu0 %v1995_v13  ;;  %v2016_v42 = vpack.c.bf16 %v2391_v33, %v2384_v32 }
  0x1f   :  { %1864 = vmatmul.mubr.msk.f32.vlgmr.msra.gmra.mrb[0].mxu0 %vm70_vm0, %v2297_v18  ;;  %1994 = vmatpush3.bf16.msra.mxu1 %v1991_v17 }
  0x20   :  { %1866 = vmatprep.mubr.msk.f32.mxu0 %vm70_vm0, %v2302_v19  ;;  %1998 = vmatpush3.bf16.msra.mxu0 %v1995_v13 }
  0x21   :  { %2000 = vmatprep.subr.bf16.mxu0 %v1999_v20  ;;  %2003 = vmatprep.subr.bf16.mxu1 %v2186_v23 }
  0x22   :  { %1878 = vmatmul.mubr.msk.f32.vlgmr.msra.gmra.mrb[0].mxu1 %vm70_vm0, %v2297_v18 }
  0x23   :  { %1867 = vmatmul.mubr.msk.f32.gmra.mrb[2].mxu0 %vm70_vm0, %v2311_v21  ;;  %1880 = vmatprep.mubr.msk.f32.mxu1 %vm70_vm0, %v2302_v19 }
  0x24   :  { %2002 = vmatpush3.bf16.msra.mxu0 %v1999_v20  ;;  %1891 = vmatprep.mubr.msk.f32.mxu0 %vm70_vm0, %v2316_v22 }
  0x25   :  { %2011 = vmatprep.subr.bf16.mxu0 %v2186_v23 }
  0x26   :  { %1881 = vmatmul.mubr.msk.f32.gmra.mrb[2].mxu1 %vm70_vm0, %v2311_v21 }
  0x27   :  { %1892 = vmatmul.mubr.msk.f32.vlgmr.msra.gmra.mrb[4].mxu0 %vm70_vm0, %v2326_v24  ;;  %1907 = vmatprep.mubr.msk.f32.mxu1 %vm2187_vm2, %v2188_v34 }
  0x28   :  { %1894 = vmatprep.mubr.msk.f32.mxu0 %vm70_vm0, %v2344_v27  ;;  %2006 = vmatpush3.bf16.xpose.msk.msra.mxu1 %vm2337_vm1, %v2004_v25 }
  0x29   :  { %2007 = vmatprep.subr.bf16.mxu1 %v2186_v23 }
  0x2b   :  { %1895 = vmatmul.mubr.msk.f32.gmra.mrb[6].mxu0 %vm70_vm0, %v2365_v30 }
  0x2c   :  { %1897 = vmatprep.mubr.msk.f32.mxu0 %vm70_vm0, %v2349_v28 }
  0x2d   :  { %2014 = vmatpush3.bf16.xpose.msk.msra.mxu0 %vm2337_vm1, %v2012_v31 }
  0x2e   :  { %2019 = vmatprep.subr.bf16.mxu0 %v2186_v23 }
  0x2f   :  { %1898 = vmatmul.mubr.msk.f32.gmra.mrb[8].mxu0 %vm70_vm0, %v2354_v29 }
  0x30   :  { %1900 = vmatprep.mubr.msk.f32.mxu0 %vm70_vm0, %v2384_v32 }
  0x33   :  { %1901 = vmatmul.mubr.msk.f32.gmra.mrb[10].mxu0 %vm70_vm0, %v2391_v33 }
  0x34   :  { %1921 = vmatprep.mubr.msk.f32.mxu0 %vm2187_vm2, %v2188_v34 }
  0xf2   :  { %v1865_v36 = vpop.f32.mrb[0].mxu0 }
  0xf3   :  { %v149_v37 = vpop.f32.mrb[1].mxu0 }
  0xf4   :  { %1908 = vmatmul.mubr.msk.f32.vlgmr.msra.gmra.mrb[4].mxu1 %vm70_vm0, %v149_v37 }
  0xf5   :  { %2010 = vmatpush3.bf16.xpose.msk.msra.mxu1 %vm2337_vm1, %v2008_v35  ;;  %1914 = vmatprep.mubr.msk.f32.mxu1 %vm2187_vm2, %v2188_v34  ;;  %v2406_v38 = vpop.f32.mrb[0].mxu1 }
  0xf6   :  { %v1868_v39 = vpop.f32.mrb[2].mxu0  ;;  %2015 = vmatprep.subr.bf16.mxu1 %v2186_v23  ;;  %v2409_v40 = vpop.f32.mrb[1].mxu1 }
  0xf7   :  { %v159_v41 = vpop.f32.mrb[3].mxu0 }
  0xf8   :  { %1922 = vmatmul.mubr.msk.f32.vlgmr.msra.gmra.mrb[12].mxu0 %vm70_vm0, %v159_v41 }
  0xf9   :  { %v2414_v43 = vpop.f32.mrb[2].mxu1  ;;  %1935 = vmatprep.mubr.msk.f32.mxu0 %vm2187_vm2, %v2188_v34 }
  0xfa   :  { %v2418_v44 = vpop.f32.mrb[4].mxu0  ;;  %v2420_v45 = vpop.f32.mrb[3].mxu1 }
  0xfb   :  { %v2422_v46 = vpop.f32.mrb[5].mxu0 }
  0xfc   :  { %1915 = vmatmul.mubr.msk.f32.vlgmr.msra.gmra.mrb[6].mxu1 %vm70_vm0, %v1865_v36  ;;  %v2020_v47 = vpack.c.bf16 %v2418_v44, %v2422_v46 }
  0xfd   :  { %2018 = vmatpush3.bf16.xpose.msk.msra.mxu1 %vm2337_vm1, %v2016_v42  ;;  %1928 = vmatprep.mubr.msk.f32.mxu1 %vm2187_vm2, %v2188_v34 }
  0xfe   :  { %v2431_v48 = vpop.f32.mrb[6].mxu0  ;;  %2021 = vmatpush3.bf16.msra.mxu0 %v2020_v47  ;;  %2022 = vmatprep.subr.bf16.mxu1 %v2186_v23 }
  0xff   :  { %v2434_v49 = vpop.f32.mrb[7].mxu0  ;;  %2025 = vmatprep.subr.bf16.mxu0 %v2186_v23 }
 0x100   :  { %v2023_v50 = vpack.c.bf16 %v2431_v48, %v2434_v49 }
 0x102   :  { %v2439_v51 = vpop.f32.mrb[8].mxu0 }
 0x103   :  { %v2441_v52 = vpop.f32.mrb[9].mxu0 }
 0x104   :  { %1929 = vmatmul.mubr.msk.f32.vlgmr.msra.gmra.mrb[8].mxu1 %vm70_vm0, %v1868_v39  ;;  %v2026_v53 = vpack.c.bf16 %v2439_v51, %v2441_v52 }
 0x105   :  { %2024 = vmatpush3.bf16.msra.mxu1 %v2023_v50  ;;  %1942 = vmatprep.mubr.msk.f32.mxu1 %vm2187_vm2, %v2188_v34 }
 0x106   :  { %2028 = vmatprep.subr.bf16.mxu1 %v2186_v23  ;;  %v2449_v54 = vpop.f32.mrb[10].mxu0 }
 0x107   :  { %v2451_v55 = vpop.f32.mrb[11].mxu0 }
 0x108   :  { %v2029_v56 = vpack.c.bf16 %v2449_v54, %v2451_v55 }
 0x1c7   :  { %v459_v57 = vpop.f32.mrb[4].mxu1 }
 0x1c8   :  { %2039 = vtanh.f32 %v459_v57  ;;  %v1909_v58 = vpop.f32.mrb[5].mxu1 }
 0x1cb   :  { %v605_v59 = vpop.f32.mrb[12].mxu0 }
 0x1cc   :  { %2041 = vtanh.f32 %v605_v59  ;;  %v1923_v60 = vpop.f32.mrb[13].mxu0 }
 0x1cf   :  { %v532_v61 = vpop.f32.mrb[6].mxu1 }
 0x1d0   :  { %2043 = vtanh.f32 %v532_v61  ;;  %v1916_v62 = vpop.f32.mrb[7].mxu1 }
 0x1d2   :  { %v2040_v63 = vpop.eup %2039 }
 0x1d3   :  { %987 = vxpose.xlu0.b32.start.end [1/1] (short) (narrow) %v2040_v63, 16  ;;  %1936 = vmatmul.mubr.msk.f32.vlgmr.msra.gmra.mrb[14].mxu0 %vm686_vm3, %v2040_v63 }
 0x1d4   :  { %2027 = vmatpush3.bf16.msra.mxu0 %v2026_v53  ;;  %1949 = vmatprep.mubr.msk.f32.mxu0 %vm2187_vm2, %v2188_v34 }
 0x1d5   :  { %1959 = vmatprep.subr.mxu0 %v2409_v40 }
 0x1d6   :  { %v2042_v0 = vpop.eup %2041 }
 0x1d7   :  { %v678_v1 = vpop.f32.mrb[8].mxu1  ;;  %1214 = vxpose.xlu1.b32.start.end [1/1] (short) (narrow) %v2042_v0, 16  ;;  %1950 = vmatmul.mubr.msk.f32.vlgmr.msra.gmra.mrb[16].mxu0 %vm686_vm3, %v2042_v0 }
 0x1d8   :  { %2045 = vtanh.f32 %v678_v1  ;;  %v1930_v2 = vpop.f32.mrb[9].mxu1  ;;  %1960 = vmatpush3.msra.mxu0 %v2409_v40 }
 0x1d9   :  { %1969 = vmatprep.subr.mxu0 %v2420_v45 }
 0x1da   :  { %v2044_v3 = vpop.eup %2043 }
 0x1db   :  { %1101 = vxpose.xlu0.b32.start.end [1/1] (short) (narrow) %v2044_v3, 16  ;;  %1943 = vmatmul.mubr.msk.f32.vlgmr.msra.gmra.mrb[10].mxu1 %vm686_vm3, %v2044_v3 }
 0x1dc   :  { %2030 = vmatpush3.bf16.msra.mxu1 %v2029_v56  ;;  %1956 = vmatprep.mubr.msk.f32.mxu1 %vm2187_vm2, %v2188_v34  ;;  %v1789_v34 = vld [vmem:[%s2628_s7] ss:$0 sm:$0xff] }
 0x1dd   :  { %1964 = vmatprep.subr.mxu1 %v2406_v38 }
 0x1e2   :  { %v2046_v4 = vpop.eup %2045 }
 0x1e3   :  { %1957 = vmatmul.mubr.msk.f32.vlgmr.msra.gmra.mrb[12].mxu1 %vm686_vm3, %v2046_v4  ;;  %1327 = vxpose.xlu1.b32.start.end [1/1] (short) (narrow) %v2046_v4, 16 }
 0x1e4   :  { %1965 = vmatpush3.msra.mxu1 %v2406_v38 }
 0x1e5   :  { %1974 = vmatprep.subr.mxu1 %v2414_v43 }
 0x253   :  { %v1003_v6 = vpop.trf.xlu0 }
 0x254   :  { %1961 = vmatprep.mubr.msk.f32.mxu0 %vm1019_vm4, %v1003_v6 }
 0x257   :  { %v1004_v7 = vpop.trf.xlu0  ;;  %v1230_v8 = vpop.trf.xlu1 }
 0x258   :  { %1962 = vmatmul.mubr.msk.f32.vlgmr.msra.gmra.mrb[18].mxu0 %vm1019_vm4, %v1004_v7 }
 0x259   :  { %1970 = vmatpush3.msra.mxu0 %v2420_v45  ;;  %1971 = vmatprep.mubr.msk.f32.mxu0 %vm1019_vm4, %v1230_v8 }
 0x25b   :  { %v1117_v9 = vpop.trf.xlu0  ;;  %v1231_v10 = vpop.trf.xlu1 }
 0x25c   :  { %1966 = vmatprep.mubr.msk.f32.mxu1 %vm1019_vm4, %v1117_v9  ;;  %1972 = vmatmul.mubr.msk.f32.vlgmr.msra.gmra.mrb[20].mxu0 %vm1019_vm4, %v1231_v10 }
 0x25f   :  { %v1118_v11 = vpop.trf.xlu0 }
 0x260   :  { %1967 = vmatmul.mubr.msk.f32.vlgmr.msra.gmra.mrb[14].mxu1 %vm1019_vm4, %v1118_v11 }
 0x261   :  { %1975 = vmatpush3.msra.mxu1 %v2414_v43 }
 0x263   :  { %v1343_v12 = vpop.trf.xlu1 }
 0x264   :  { %1976 = vmatprep.mubr.msk.f32.mxu1 %vm1019_vm4, %v1343_v12 }
 0x267   :  { %v1344_v13 = vpop.trf.xlu1 }
 0x268   :  { %1977 = vmatmul.mubr.msk.f32.vlgmr.msra.gmra.mrb[16].mxu1 %vm1019_vm4, %v1344_v13 }
 0x2a6   :  { %v756_v14 = vpop.f32.mrb[14].mxu0 }
 0x2a7   :  { %v979_v15 = vadd.f32 %v756_v14, %v2409_v40  ;;  %v1937_v16 = vpop.f32.mrb[15].mxu0 }
 0x2a9   :  { %2047 = vtanh.f32 %v979_v15 }
 0x2aa   :  { %v902_v17 = vpop.f32.mrb[16].mxu0 }
 0x2ab   :  { %v981_v20 = vadd.f32 %v902_v17, %v2420_v45  ;;  %v1951_v23 = vpop.f32.mrb[17].mxu0 }
 0x2ad   :  { %2049 = vtanh.f32 %v981_v20 }
 0x2ae   :  { %v829_v25 = vpop.f32.mrb[10].mxu1 }
 0x2af   :  { %v980_v26 = vadd.f32 %v2406_v38, %v829_v25  ;;  %v1944_v31 = vpop.f32.mrb[11].mxu1 }
 0x2b1   :  { %2051 = vtanh.f32 %v980_v26 }
 0x2b3   :  { %v2048_v35 = vpop.eup %2047 }
 0x2b4   :  { %v1463_v36 = vmul.f32 %v2048_v35, %v1789_v34 }
 0x2b6   :  { %v975_v37 = vpop.f32.mrb[12].mxu1  ;;  %v1467_v39 = vsel %vm686_vm3, %v1463_v36, 0.0 }
 0x2b7   :  { %v2050_v40 = vpop.eup %2049  ;;  %v982_v41 = vadd.f32 %v2414_v43, %v975_v37  ;;  %v1958_v42 = vpop.f32.mrb[13].mxu1  ;;  %1468 = vadd.xlane.f32.xlu0 %v1467_v39 }
 0x2b8   :  { %v2487_v45 = vmul.f32 %v2050_v40, %v1789_v34 }
 0x2b9   :  { %2053 = vtanh.f32 %v982_v41 }
 0x2bb   :  { %v2052_v38 = vpop.eup %2051 }
 0x2bc   :  { %v1464_v47 = vmul.f32 %v2052_v38, %v1789_v34 }
 0x2be   :  { %v1470_v50 = vsel %vm686_vm3, %v1464_v47, 0.0 }
 0x2bf   :  { %1471 = vadd.xlane.f32.xlu1 %v1470_v50 }
 0x2c3   :  { %v2054_v53 = vpop.eup %2053 }
 0x2c4   :  { %v2490_v56 = vmul.f32 %v2054_v53, %v1789_v34 }
 0x32b   :  { %v1963_v57 = vpop.f32.mrb[18].mxu0 }
 0x32c   :  { %v1441_v58 = vadd.f32 %v1963_v57, %v2418_v44  ;;  %v1092_v59 = vpop.f32.mrb[19].mxu0  ;;  %v1790_v44 = vld [vmem:[%s2629_s8] ss:$0 sm:$0xff] }
 0x32d   :  { %v1440_v60 = vadd.f32 %v1092_v59, %v2422_v46  ;;  %v1473_v59 = vsel %vm686_vm3, %v2487_v45, 0.0 }
 0x32e   :  { %2055 = vtanh.f32 %v1441_v58  ;;  %v1476_v58 = vsel %vm686_vm3, %v2490_v56, 0.0 }
 0x32f   :  { %2057 = vtanh.f32 %v1440_v60  ;;  %v1973_v43 = vpop.f32.mrb[20].mxu0 }
 0x330   :  { %v1445_v61 = vadd.f32 %v1973_v43, %v2439_v51  ;;  %v1318_v62 = vpop.f32.mrb[21].mxu0 }
 0x331   :  { %v1444_v63 = vadd.f32 %v1318_v62, %v2441_v52 }
 0x332   :  { %2059 = vtanh.f32 %v1445_v61 }
 0x333   :  { %2061 = vtanh.f32 %v1444_v63  ;;  %v1968_v0 = vpop.f32.mrb[14].mxu1 }
 0x334   :  { %v1443_v1 = vadd.f32 %v1968_v0, %v2431_v48  ;;  %v1205_v2 = vpop.f32.mrb[15].mxu1 }
 0x335   :  { %v1442_v3 = vadd.f32 %v1205_v2, %v2434_v49 }
 0x336   :  { %2063 = vtanh.f32 %v1443_v1 }
 0x337   :  { %2065 = vtanh.f32 %v1442_v3 }
 0x338   :  { %v2056_v46 = vpop.eup %2055 }
 0x339   :  { %v2058_v4 = vpop.eup %2057  ;;  %v1487_v51 = vmul.f32 %v2056_v46, %v1790_v44 }
 0x33a   :  { %v1486_v6 = vmul.f32 %v2058_v4, %v1790_v44 }
 0x33b   :  { %v1978_v7 = vpop.f32.mrb[16].mxu1  ;;  %v1497_v52 = vsel %vm686_vm3, %v1487_v51, 0.0 }
 0x33c   :  { %v2060_v8 = vpop.eup %2059  ;;  %v1447_v9 = vadd.f32 %v1978_v7, %v2449_v54  ;;  %v1431_v48 = vpop.f32.mrb[17].mxu1  ;;  %1498 = vadd.xlane.f32.xlu1 %v1497_v52  ;;  %v1494_v49 = vsel %vm686_vm3, %v1486_v6, 0.0 }
 0x33d   :  { %v2062_v10 = vpop.eup %2061  ;;  %v1446_v11 = vadd.f32 %v1431_v48, %v2451_v55  ;;  %1495 = vadd.xlane.f32.xlu0 %v1494_v49  ;;  %v1491_v12 = vmul.f32 %v2060_v8, %v1790_v44 }
 0x33e   :  { %2067 = vtanh.f32 %v1447_v9  ;;  %v1490_v13 = vmul.f32 %v2062_v10, %v1790_v44 }
 0x33f   :  { %2069 = vtanh.f32 %v1446_v11  ;;  %v1509_v14 = vsel %vm686_vm3, %v1491_v12, 0.0  ;;  %v2518_v12 = vstv %s2621_s0 }
 0x340   :  { %v2064_v15 = vpop.eup %2063  ;;  %1510 = vadd.xlane.f32.xlu1 %v1509_v14  ;;  %v1506_v16 = vsel %vm686_vm3, %v1490_v13, 0.0 }
 0x341   :  { %v2066_v17 = vpop.eup %2065  ;;  %1507 = vadd.xlane.f32.xlu0 %v1506_v16  ;;  %v1489_v54 = vmul.f32 %v2064_v15, %v1790_v44 }
 0x342   :  { %v1488_v23 = vmul.f32 %v2066_v17, %v1790_v44 }
 0x343   :  { %v1503_v20 = vsel %vm686_vm3, %v1489_v54, 0.0 }
 0x344   :  { %v1469_v25 = vpop.xlane.xlu0 %1468  ;;  %1504 = vadd.xlane.f32.xlu1 %v1503_v20  ;;  %v1500_v31 = vsel %vm686_vm3, %v1488_v23, 0.0 }
 0x345   :  { %v1518_v55 = vrot.slane %v1469_v25, 4 }
 0x347   :  { %v1519_v26 = vmax.f32 %v1469_v25, %v1518_v55 }
 0x348   :  { %v2068_v34 = vpop.eup %2067  ;;  %1501 = vadd.xlane.f32.xlu1 %v1500_v31 }
 0x349   :  { %v2070_v35 = vpop.eup %2069  ;;  %v1520_v36 = vrot.slane %v1519_v26, 2  ;;  %v1493_v37 = vmul.f32 %v2068_v34, %v1790_v44 }
 0x34a   :  { %v1492_v39 = vmul.f32 %v2070_v35, %v1790_v44 }
 0x34b   :  { %v1521_v40 = vmax.f32 %v1519_v26, %v1520_v36  ;;  %v1515_v41 = vsel %vm686_vm3, %v1493_v37, 0.0 }
 0x34c   :  { %v1472_v42 = vpop.xlane.xlu1 %1471  ;;  %1516 = vadd.xlane.f32.xlu1 %v1515_v41  ;;  %v1512_v38 = vsel %vm686_vm3, %v1492_v39, 0.0 }
 0x34d   :  { %v1522_v47 = vrot.slane %v1521_v40, 1  ;;  %v1524_v50 = vrot.slane %v1472_v42, 4  ;;  %1513 = vadd.xlane.f32.xlu0 %v1512_v38 }
 0x34f   :  { %v1523_v53 = vmax.f32 %v1521_v40, %v1522_v47  ;;  %v1525_v57 = vmax.f32 %v1472_v42, %v1524_v50 }
 0x350   :  { %1477 = vadd.xlane.f32.xlu1 %v1476_v58 }
 0x351   :  { %v1542_v60 = vsub.f32 %v1469_v25, %v1523_v53  ;;  %v1526_v43 = vrot.slane %v1525_v57, 2  ;;  %1474 = vadd.xlane.f32.xlu0 %v1473_v59 }
 0x353   :  { %v1546_v61 = vmul.f32 1.442695, %v1542_v60  ;;  %v1527_v62 = vmax.f32 %v1525_v57, %v1526_v43 }
 0x355   :  { %2071 = vpow2.f32 %v1546_v61  ;;  %v1528_v63 = vrot.slane %v1527_v62, 1 }
 0x357   :  { %v1529_v0 = vmax.f32 %v1527_v62, %v1528_v63 }
 0x359   :  { %v1543_v1 = vsub.f32 %v1472_v42, %v1529_v0 }
 0x35b   :  { %v1548_v2 = vmul.f32 1.442695, %v1543_v1 }
 0x35d   :  { %2073 = vpow2.f32 %v1548_v2 }
 0x35f   :  { %v2072_v3 = vpop.eup %2071 }
 0x360   :  { %v1554_v44 = vrot.slane %v2072_v3, 4 }
 0x362   :  { %v1555_v46 = vadd.f32 %v2072_v3, %v1554_v44 }
 0x364   :  { %v1556_v4 = vrot.slane %v1555_v46, 2 }
 0x366   :  { %v1557_v56 = vadd.f32 %v1556_v4, %v1555_v46 }
 0x367   :  { %v2074_v51 = vpop.eup %2073 }
 0x368   :  { %v1560_v6 = vrot.slane %v2074_v51, 4  ;;  %v1558_v7 = vrot.slane %v1557_v56, 1 }
 0x36a   :  { %v1561_v45 = vadd.f32 %v2074_v51, %v1560_v6  ;;  %v1559_v52 = vadd.f32 %v1558_v7, %v1557_v56 }
 0x36c   :  { %v1562_v8 = vrot.slane %v1561_v45, 2  ;;  %2075 = vrcp.f32 %v1559_v52 }
 0x36e   :  { %v1563_v9 = vadd.f32 %v1562_v8, %v1561_v45 }
 0x370   :  { %v1564_v48 = vrot.slane %v1563_v9, 1 }
 0x372   :  { %v1565_v49 = vadd.f32 %v1564_v48, %v1563_v9 }
 0x374   :  { %2077 = vrcp.f32 %v1565_v49 }
 0x376   :  { %v2076_v10 = vpop.eup %2075 }
 0x377   :  { %v1579_v11 = vmul.f32 %v2076_v10, %v2072_v3 }
 0x379   :  { %v1678_v13 = vmul.f32 %v1579_v11, %v2264_v5 }
 0x37b   :  { %v1683_v14 = vmul.f32 %v2518_v12, %v1678_v13 }
 0x37d   :  { %1687 = vst.msk [vmem:[#allocation7] sm:$0xff] %vm70_vm0, %v1683_v14 }
 0x37e   :  { %v2078_v15 = vpop.eup %2077 }
 0x37f   :  { %v1581_v16 = vmul.f32 %v2078_v15, %v2074_v51 }
 0x381   :  { %v1679_v17 = vmul.f32 %v1581_v16, %v2297_v18 }
 0x383   :  { %v1684_v54 = vmul.f32 %v2518_v12, %v1679_v17 }
 0x385   :  { %1688 = vst.msk [vmem:[#allocation7 + $0x8] sm:$0xff] %vm70_vm0, %v1684_v54 }
 0x3c9   :  { %v1499_v20 = vpop.xlane.xlu1 %1498 }
 0x3ca   :  { %v1496_v23 = vpop.xlane.xlu0 %1495 }
 0x3cb   :  { %v1586_v25 = vmax.f32 %v1496_v23, %v1499_v20 }
 0x3cd   :  { %v1587_v55 = vrot.slane %v1586_v25, 4  ;;  %v1511_v26 = vpop.xlane.xlu1 %1510 }
 0x3ce   :  { %v1508_v31 = vpop.xlane.xlu0 %1507 }
 0x3cf   :  { %v1588_v34 = vmax.f32 %v1586_v25, %v1587_v55  ;;  %v1600_v5 = vmax.f32 %v1508_v31, %v1511_v26 }
 0x3d1   :  { %v1589_v35 = vrot.slane %v1588_v34, 2  ;;  %v1601_v36 = vrot.slane %v1600_v5, 4  ;;  %v1505_v37 = vpop.xlane.xlu1 %1504 }
 0x3d3   :  { %v1590_v39 = vmax.f32 %v1588_v34, %v1589_v35  ;;  %v1602_v40 = vmax.f32 %v1600_v5, %v1601_v36 }
 0x3d5   :  { %v1591_v41 = vrot.slane %v1590_v39, 1  ;;  %v1603_v42 = vrot.slane %v1602_v40, 2  ;;  %v1502_v18 = vpop.xlane.xlu1 %1501 }
 0x3d6   :  { %v1593_v38 = vmax.f32 %v1502_v18, %v1505_v37 }
 0x3d7   :  { %v1592_v47 = vmax.f32 %v1590_v39, %v1591_v41  ;;  %v1604_v50 = vmax.f32 %v1602_v40, %v1603_v42 }
 0x3d8   :  { %v1594_v53 = vrot.slane %v1593_v38, 4 }
 0x3d9   :  { %v1614_v57 = vsub.f32 %v1496_v23, %v1592_v47  ;;  %v1615_v58 = vsub.f32 %v1499_v20, %v1592_v47  ;;  %v1605_v59 = vrot.slane %v1604_v50, 1  ;;  %v1517_v60 = vpop.xlane.xlu1 %1516 }
 0x3da   :  { %v1595_v43 = vmax.f32 %v1593_v38, %v1594_v53  ;;  %v1514_v61 = vpop.xlane.xlu0 %1513 }
 0x3db   :  { %v1622_v62 = vmul.f32 1.442695, %v1614_v57  ;;  %v1624_v63 = vmul.f32 1.442695, %v1615_v58  ;;  %v1606_v0 = vmax.f32 %v1604_v50, %v1605_v59  ;;  %v1607_v1 = vmax.f32 %v1514_v61, %v1517_v60 }
 0x3dc   :  { %v1596_v2 = vrot.slane %v1595_v43, 2 }
 0x3dd   :  { %2079 = vpow2.f32 %v1622_v62  ;;  %v1618_v3 = vsub.f32 %v1508_v31, %v1606_v0  ;;  %v1619_v44 = vsub.f32 %v1511_v26, %v1606_v0  ;;  %v1608_v46 = vrot.slane %v1607_v1, 4  ;;  %v1478_v4 = vpop.xlane.xlu1 %1477 }
 0x3de   :  { %2081 = vpow2.f32 %v1624_v63  ;;  %v1597_v56 = vmax.f32 %v1595_v43, %v1596_v2  ;;  %v1536_v51 = vrot.slane %v1478_v4, 4  ;;  %v1475_v6 = vpop.xlane.xlu0 %1474 }
 0x3df   :  { %v1630_v7 = vmul.f32 1.442695, %v1618_v3  ;;  %v1632_v45 = vmul.f32 1.442695, %v1619_v44  ;;  %v1609_v52 = vmax.f32 %v1607_v1, %v1608_v46  ;;  %v1530_v8 = vrot.slane %v1475_v6, 4 }
 0x3e0   :  { %v1598_v9 = vrot.slane %v1597_v56, 1  ;;  %v1537_v48 = vmax.f32 %v1478_v4, %v1536_v51 }
 0x3e1   :  { %2083 = vpow2.f32 %v1630_v7  ;;  %v1610_v49 = vrot.slane %v1609_v52, 2  ;;  %v1531_v10 = vmax.f32 %v1475_v6, %v1530_v8 }
 0x3e2   :  { %2085 = vpow2.f32 %v1632_v45  ;;  %v1599_v11 = vmax.f32 %v1597_v56, %v1598_v9  ;;  %v1538_v13 = vrot.slane %v1537_v48, 2 }
 0x3e3   :  { %v1611_v14 = vmax.f32 %v1609_v52, %v1610_v49  ;;  %v1532_v15 = vrot.slane %v1531_v10, 2 }
 0x3e4   :  { %v1616_v16 = vsub.f32 %v1502_v18, %v1599_v11  ;;  %v1617_v17 = vsub.f32 %v1505_v37, %v1599_v11  ;;  %v1539_v54 = vmax.f32 %v1537_v48, %v1538_v13 }
 0x3e5   :  { %v1612_v20 = vrot.slane %v1611_v14, 1  ;;  %v1533_v23 = vmax.f32 %v1531_v10, %v1532_v15 }
 0x3e6   :  { %v1626_v25 = vmul.f32 1.442695, %v1616_v16  ;;  %v1628_v55 = vmul.f32 1.442695, %v1617_v17  ;;  %v1540_v26 = vrot.slane %v1539_v54, 1 }
 0x3e7   :  { %v2526_v31 = vpop.eup %2079  ;;  %v1613_v34 = vmax.f32 %v1611_v14, %v1612_v20  ;;  %v1534_v5 = vrot.slane %v1533_v23, 1 }
 0x3e8   :  { %v2528_v35 = vpop.eup %2081  ;;  %2087 = vpow2.f32 %v1626_v25  ;;  %v1541_v36 = vmax.f32 %v1539_v54, %v1540_v26 }
 0x3e9   :  { %v1638_v39 = vadd.f32 %v2528_v35, %v2526_v31  ;;  %2089 = vpow2.f32 %v1628_v55  ;;  %v1620_v40 = vsub.f32 %v1514_v61, %v1613_v34  ;;  %v1621_v37 = vsub.f32 %v1517_v60, %v1613_v34 }
 0x3ea   :  { %v1545_v41 = vsub.f32 %v1478_v4, %v1541_v36  ;;  %v1535_v42 = vmax.f32 %v1533_v23, %v1534_v5 }
 0x3eb   :  { %v2532_v18 = vpop.eup %2083  ;;  %v1639_v38 = vrot.slane %v1638_v39, 4  ;;  %v1634_v47 = vmul.f32 1.442695, %v1620_v40  ;;  %v1636_v50 = vmul.f32 1.442695, %v1621_v37 }
 0x3ec   :  { %v2534_v53 = vpop.eup %2085  ;;  %v1552_v57 = vmul.f32 1.442695, %v1545_v41  ;;  %v1544_v58 = vsub.f32 %v1475_v6, %v1535_v42  ;;  %v1699_v42 = vstv %s2622_s1  ;;  %s2189_s1 = smov [#allocation8]  }
 0x3ed   :  { %v1640_v59 = vadd.f32 %v1639_v38, %v1638_v39  ;;  %v1652_v43 = vadd.f32 %v2534_v53, %v2532_v18  ;;  %2091 = vpow2.f32 %v1634_v47  ;;  %s1733_s6 = sshll.u32 %s2189_s1, 4  ;;  %s1734_s6 = int_to_ptr.vmem [resolvable:$true] %s1733_s6 }
 0x3ee   :  { %2093 = vpow2.f32 %v1636_v50  ;;  %v1550_v62 = vmul.f32 1.442695, %v1544_v58  ;;  %s2133_s4 = scalar_lea.vmem %s1734_s6, 1024  ;;  %p2138_p9 = scmp.lt.s32.totalorder %s1734_s6, %s1734_s6 }
 0x3ef   :  { %v1641_v61 = vrot.slane %v1640_v59, 2  ;;  %v1653_v60 = vrot.slane %v1652_v43, 4  ;;  %2095 = vpow2.f32 %v1552_v57  ;;  %p2134_p8 = scmp.ne.s32.totalorder %s1734_s6, %s2133_s4  ;;  %p2139_p10 = scmp.lt.s32.totalorder %s2133_s4, %s2133_s4 }
 0x3f0   :  { %2097 = vpow2.f32 %v1550_v62 }
 0x3f1   :  { %v1642_v63 = vadd.f32 %v1641_v61, %v1640_v59  ;;  %v1654_v0 = vadd.f32 %v1653_v60, %v1652_v43  ;;  %p2140_p11 = por %p2139_p10, %p2138_p9 }
 0x3f2   :  { %v2538_v1 = vpop.eup %2087 }
 0x3f3   :  { %v2540_v2 = vpop.eup %2089  ;;  %v1643_v3 = vrot.slane %v1642_v63, 1  ;;  %v1655_v44 = vrot.slane %v1654_v0, 2  ;;  %p2141_p12 = pnand %p2140_p11, %p2134_p8 }
 0x3f4   :  { %v1645_v46 = vadd.f32 %v2540_v2, %v2538_v1 }
 0x3f5   :  { %v1644_v4 = vadd.f32 %v1643_v3, %v1642_v63  ;;  %v1656_v56 = vadd.f32 %v1655_v44, %v1654_v0 }
 0x3f6   :  { %v1646_v51 = vrot.slane %v1645_v46, 4 }
 0x3f7   :  { %v2544_v6 = vpop.eup %2091  ;;  %2099 = vrcp.f32 %v1644_v4  ;;  %v1657_v7 = vrot.slane %v1656_v56, 1 }
 0x3f8   :  { %v2094_v45 = vpop.eup %2093  ;;  %v1647_v52 = vadd.f32 %v1646_v51, %v1645_v46 }
 0x3f9   :  { %v2546_v8 = vpop.eup %2095  ;;  %v1658_v9 = vadd.f32 %v1657_v7, %v1656_v56  ;;  %v1659_v48 = vadd.f32 %v2094_v45, %v2544_v6 }
 0x3fa   :  { %v2098_v49 = vpop.eup %2097  ;;  %v1648_v10 = vrot.slane %v1647_v52, 2  ;;  %v1572_v11 = vrot.slane %v2546_v8, 4 }
 0x3fb   :  { %2101 = vrcp.f32 %v1658_v9  ;;  %v1660_v13 = vrot.slane %v1659_v48, 4  ;;  %v1566_v14 = vrot.slane %v2098_v49, 4 }
 0x3fc   :  { %v1649_v15 = vadd.f32 %v1648_v10, %v1647_v52  ;;  %v1573_v16 = vadd.f32 %v2546_v8, %v1572_v11 }
 0x3fd   :  { %v1661_v17 = vadd.f32 %v1660_v13, %v1659_v48  ;;  %v1567_v54 = vadd.f32 %v2098_v49, %v1566_v14 }
 0x3fe   :  { %v1650_v20 = vrot.slane %v1649_v15, 1  ;;  %v1574_v23 = vrot.slane %v1573_v16, 2 }
 0x3ff   :  { %v1662_v25 = vrot.slane %v1661_v17, 2  ;;  %v1568_v55 = vrot.slane %v1567_v54, 2 }
 0x400   :  { %v1651_v26 = vadd.f32 %v1650_v20, %v1649_v15  ;;  %v1575_v34 = vadd.f32 %v1574_v23, %v1573_v16 }
 0x401   :  { %v2100_v5 = vpop.eup %2099  ;;  %v1663_v36 = vadd.f32 %v1662_v25, %v1661_v17  ;;  %v1569_v39 = vadd.f32 %v1568_v55, %v1567_v54 }
 0x402   :  { %v1667_v40 = vmul.f32 %v2100_v5, %v2526_v31  ;;  %v1668_v37 = vmul.f32 %v2100_v5, %v2528_v35  ;;  %2103 = vrcp.f32 %v1651_v26  ;;  %v1576_v41 = vrot.slane %v1575_v34, 1 }
 0x403   :  { %v1664_v38 = vrot.slane %v1663_v36, 1  ;;  %v1570_v47 = vrot.slane %v1569_v39, 1 }
 0x404   :  { %v1691_v50 = vmul.f32 %v1667_v40, %v2316_v22  ;;  %v1692_v57 = vmul.f32 %v1668_v37, %v2326_v24  ;;  %v1577_v62 = vadd.f32 %v1576_v41, %v1575_v34 }
 0x405   :  { %v2102_v58 = vpop.eup %2101  ;;  %v1665_v59 = vadd.f32 %v1664_v38, %v1663_v36  ;;  %v1571_v43 = vadd.f32 %v1570_v47, %v1569_v39 }
 0x406   :  { %v1700_v61 = vmul.f32 %v1699_v42, %v1691_v50  ;;  %v1701_v31 = vmul.f32 %v1699_v42, %v1692_v57  ;;  %v1673_v35 = vmul.f32 %v2102_v58, %v2532_v18  ;;  %v1674_v60 = vmul.f32 %v2102_v58, %v2534_v53 }
 0x407   :  { %2105 = vrcp.f32 %v1665_v59 }
 0x408   :  { %1708 = vst.msk [vmem:[#allocation8] sm:$0xff] %vm70_vm0, %v1700_v61  ;;  %1709 = vst.msk [vmem:[#allocation8 + $0x8] sm:$0xff] %vm70_vm0, %v1701_v31  ;;  %v1695_v63 = vmul.f32 %v1673_v35, %v2349_v28  ;;  %v1696_v22 = vmul.f32 %v1674_v60, %v2354_v29  ;;  %2107 = vrcp.f32 %v1571_v43 }
 0x409   :  { %2109 = vrcp.f32 %v1577_v62 }
 0x40a   :  { %v1704_v24 = vmul.f32 %v1699_v42, %v1695_v63  ;;  %v1705_v0 = vmul.f32 %v1699_v42, %v1696_v22 }
 0x40c   :  { %v2104_v3 = vpop.eup %2103  ;;  %1712 = vst.msk [vmem:[#allocation8 + $0x20] sm:$0xff] %vm70_vm0, %v1704_v24  ;;  %1713 = vst.msk [vmem:[#allocation8 + $0x28] sm:$0xff] %vm70_vm0, %v1705_v0 }
 0x40d   :  { %v1670_v18 = vmul.f32 %v2104_v3, %v2538_v1  ;;  %v1671_v53 = vmul.f32 %v2104_v3, %v2540_v2 }
 0x40f   :  { %v1693_v44 = vmul.f32 %v1670_v18, %v2344_v27  ;;  %v1694_v46 = vmul.f32 %v1671_v53, %v2365_v30 }
 0x411   :  { %v2106_v28 = vpop.eup %2105  ;;  %v1702_v4 = vmul.f32 %v1699_v42, %v1693_v44  ;;  %v1703_v29 = vmul.f32 %v1699_v42, %v1694_v46 }
 0x412   :  { %v2108_v56 = vpop.eup %2107  ;;  %v1676_v51 = vmul.f32 %v2106_v28, %v2544_v6  ;;  %v1677_v7 = vmul.f32 %v2106_v28, %v2094_v45 }
 0x413   :  { %v2110_v52 = vpop.eup %2109  ;;  %1710 = vst.msk [vmem:[#allocation8 + $0x10] sm:$0xff] %vm70_vm0, %v1702_v4  ;;  %1711 = vst.msk [vmem:[#allocation8 + $0x18] sm:$0xff] %vm70_vm0, %v1703_v29  ;;  %v1583_v9 = vmul.f32 %v2108_v56, %v2098_v49 }
 0x414   :  { %v1697_v1 = vmul.f32 %v1676_v51, %v2384_v32  ;;  %v1698_v27 = vmul.f32 %v1677_v7, %v2391_v33  ;;  %v1585_v30 = vmul.f32 %v2110_v52, %v2546_v8 }
 0x415   :  { %v1680_v2 = vmul.f32 %v1583_v9, %v2302_v19 }
 0x416   :  { %v1706_v6 = vmul.f32 %v1699_v42, %v1697_v1  ;;  %v1707_v45 = vmul.f32 %v1699_v42, %v1698_v27  ;;  %v1681_v48 = vmul.f32 %v1585_v30, %v2311_v21 }
 0x417   :  { %v1685_v10 = vmul.f32 %v2518_v12, %v1680_v2 }
 0x418   :  { %1714 = vst.msk [vmem:[#allocation8 + $0x30] sm:$0xff] %vm70_vm0, %v1706_v6  ;;  %1715 = vst.msk [vmem:[#allocation8 + $0x38] sm:$0xff] %vm70_vm0, %v1707_v45  ;;  %v1686_v32 = vmul.f32 %v2518_v12, %v1681_v48 }
 0x419   :  { %1689 = vst.msk [vmem:[#allocation7 + $0x10] sm:$0xff] %vm70_vm0, %v1685_v10 }
 0x41a   :  { %2144 = shalt.err (!%p2141_p12)
}
 0x41b   :  { %s2145_s2 = scalar_lea.hbm %s2631_s10, 1024 }
 0x41c   :  { %p2146_p13 = scmp.ne.s32.totalorder %s2631_s10, %s2145_s2  ;;  %p2149_p0 = scmp.lt.u32.totalorder %s2145_s2, %s2631_s10 }
 0x41e   :  { %p2151_p1 = pnand %p2149_p0, %p2146_p13 }
 0x420   :  { %2154 = shalt.err (!%p2151_p1)
}
 0x421   :  { %1739 = dma.vmem_to_hbm [thread:$0]  %s1734_s6, 1024, %s2631_s10, [#allocation9], %s2184_s23, %s2184_s23, %s2185_s24   ;;  %1690 = vst.msk [vmem:[#allocation7 + $0x18] sm:$0xff] %vm70_vm0, %v1686_v32 }
 0x422   :  { %s2155_s19 = scalar_lea.vmem %s2582_s30, 512  ;;  %p2160_p3 = scmp.lt.s32.totalorder %s2582_s30, %s2582_s30 }
 0x423   :  { %p2156_p2 = scmp.ne.s32.totalorder %s2582_s30, %s2155_s19  ;;  %p2161_p4 = scmp.lt.s32.totalorder %s2155_s19, %s2155_s19 }
 0x425   :  { %p2162_p5 = por %p2161_p4, %p2160_p3 }
 0x427   :  { %p2163_p6 = pnand %p2162_p5, %p2156_p2 }
 0x429   :  { %2166 = shalt.err (!%p2163_p6)
}
 0x42a   :  { %s2167_s22 = scalar_lea.hbm %s2630_s9, 512 }
 0x42b   :  { %p2168_p7 = scmp.ne.s32.totalorder %s2630_s9, %s2167_s22  ;;  %p2171_p8 = scmp.lt.u32.totalorder %s2167_s22, %s2630_s9 }
 0x42d   :  { %p2173_p9 = pnand %p2171_p8, %p2168_p7 }
 0x42f   :  { %2176 = shalt.err (!%p2173_p9)
}
 0x430   :  { %1727 = dma.vmem_to_hbm [thread:$0]  %s2582_s30, 512, %s2630_s9, [#allocation6], %s2184_s23, %s2184_s23, %s2185_s24  }
 0x431   :  { %2179 = dma.done.wait [#allocation6], 512  }
 0x432   :  { %2180 = vsyncadd [#allocation6], 4294966784 }
 0x433   :  { %2181 = dma.done.wait [#allocation9], 1024  }
 0x434   :  { %2182 = vsyncadd [#allocation9], 4294966272 }
 0x435   :  { %1746 = vsyncpa [#allocation5], 1 }
 0x436   :  { %1747 = vsyncpa [#allocation6], 1 }
 0x437   :  { %1748 = vsyncpa [#allocation9], 1 }

</bundles_post_ra>
